<compile_context>
chip_gen: v6e
topology: v6e:2x2x1
jax: 0.10.0
libtpu: 0.0.40
codegen_flags: <defaults>
</compile_context>

<pallas_src>
import functools

import jax
import jax.numpy as jnp
from jax import lax
from jax.experimental import pallas as pl
from jax.experimental.pallas import tpu as pltpu


def _round_up(x, m):
    return (x + m - 1) // m * m


def _vmem_capacity_bytes():
    """Generation-aware VMEM capacity (v5e/v6e ~128 MiB, v7x 64 MiB per TC)."""
    try:
        cap = getattr(pltpu.get_tpu_info(), "vmem_capacity_bytes", None)
        if cap:
            return int(cap)
    except Exception:
        pass
    return 64 * 1024 * 1024  # conservative default (v7x per-TC VMEM)


def _resnet_block1d_kernel(
    xflat_ref,   # (Cp, Wc + 2*maxpad) f32   per-sample zero-haloed flattened input
    mask_ref,    # (1, Wc)             f32   1.0 on valid output columns, 0.0 on junk
    w1s_ref,     # (Cp, k1*Cp)         bf16  conv1 weights stacked tap-major
    g1_ref,      # (Cp, 1)             f32   bn1 gamma
    be1_ref,     # (Cp, 1)             f32   bn1 beta
    w2s_ref,     # (Cp, 5*Cp)          bf16  conv2 weights stacked tap-major
    g2_ref,      # (Cp, 1)             f32   bn2 gamma
    be2_ref,     # (Cp, 1)             f32   bn2 beta
    o_ref,       # (Cp, Wc)            f32   output
    rhs_ref,     # scratch (Kmax*Cp, Wc) bf16  im2col RHS, reused by conv1 and conv2
    *,
    k1: int,
    pad: int,
    maxpad: int,
    n_valid: int,
    eps: float,
):
    Cp, Wc = o_ref.shape
    inv_n = 1.0 / float(n_valid)
    mask = mask_ref[...]                                           # (1, Wc)

    # ---------------- Conv1: im2col into the bf16 scratch, one MXU matmul ---------
    off1 = maxpad - pad
    for k in range(k1):
        rhs_ref[k * Cp:(k + 1) * Cp, :] = (
            xflat_ref[:, off1 + k:off1 + k + Wc].astype(jnp.bfloat16))
    acc1 = jnp.dot(w1s_ref[...], rhs_ref[0:k1 * Cp, :],
                   preferred_element_type=jnp.float32)             # (Cp, Wc) f32

    # ------- BatchNorm1: single-pass masked stats, folded scale/shift, ReLU -------
    xm1 = acc1 * mask
    mean1 = jnp.sum(xm1, axis=1, keepdims=True) * inv_n            # (Cp, 1)
    ex21 = jnp.sum(xm1 * xm1, axis=1, keepdims=True) * inv_n       # E[x^2] (masked)
    var1 = ex21 - mean1 * mean1
    scale1 = g1_ref[...] * lax.rsqrt(var1 + eps)
    shift1 = be1_ref[...] - mean1 * scale1
    # ReLU + mask (junk columns must be zero: they double as conv2 halos).
    hb = (jnp.maximum(acc1 * scale1 + shift1, 0.0) * mask).astype(jnp.bfloat16)

    # ---------------- Conv2 (k=5, padding=2): im2col with zero edge columns -------
    for k in range(5):
        row = k * Cp
        s = k - 2
        if s == 0:
            rhs_ref[row:row + Cp, :] = hb
        elif s < 0:
            d = -s
            rhs_ref[row:row + Cp, 0:d] = jnp.zeros((Cp, d), jnp.bfloat16)
            rhs_ref[row:row + Cp, d:Wc] = hb[:, 0:Wc - d]
        else:
            d = s
            rhs_ref[row:row + Cp, 0:Wc - d] = hb[:, d:Wc]
            rhs_ref[row:row + Cp, Wc - d:Wc] = jnp.zeros((Cp, d), jnp.bfloat16)
    acc2 = jnp.dot(w2s_ref[...], rhs_ref[0:5 * Cp, :],
                   preferred_element_type=jnp.float32)             # (Cp, Wc) f32

    # ---------------- BatchNorm2 (folded) + residual add (exact f32) --------------
    xm2 = acc2 * mask
    mean2 = jnp.sum(xm2, axis=1, keepdims=True) * inv_n
    ex22 = jnp.sum(xm2 * xm2, axis=1, keepdims=True) * inv_n
    var2 = ex22 - mean2 * mean2
    scale2 = g2_ref[...] * lax.rsqrt(var2 + eps)
    shift2 = be2_ref[...] - mean2 * scale2
    o_ref[...] = acc2 * scale2 + shift2 + xflat_ref[:, maxpad:maxpad + Wc]


def resnet_block1d(x, params, *, kernel_size, padding, eps=1e-5):
    """x: (N, C, L) float32.  params: dict of PyTorch-layout parameters."""
    N, C, L = x.shape
    k1 = kernel_size
    # Residual add requires the first conv to preserve length.
    assert L + 2 * padding - k1 + 1 == L, "padding must preserve length"

    K2 = 5
    Kmax = max(k1, K2)
    Cp = _round_up(C, 16)               # bf16-tile-aligned channel stride
    maxpad = max(padding, 2)            # halo wide enough for both convs
    B = L + 2 * maxpad                  # per-sample block width in the flat layout
    w_valid = N * B
    Wc = _round_up(w_valid, 128)        # lane-dense compute / output width
    w_in = Wc + 2 * maxpad              # extra trailing zeros for tap-slice overrun

    x = x.astype(jnp.float32)

    # (N, C, L) -> (Cp, N, B) with zero channel padding + per-sample halos -> (Cp, w_in)
    xt = jnp.transpose(x, (1, 0, 2))                                    # (C, N, L)
    xb = jnp.pad(xt, ((0, Cp - C), (0, 0), (maxpad, maxpad)))           # (Cp, N, B)
    xflat = xb.reshape(Cp, w_valid)
    xflat = jnp.pad(xflat, ((0, 0), (0, w_in - w_valid)))               # (Cp, w_in)

    # Validity mask over output columns (1.0 inside each sample's L positions).
    col = jnp.arange(Wc)
    mask = ((col < w_valid) & ((col % B) < L)).astype(jnp.float32)[None, :]

    # Weights: PyTorch (C_out, C_in, K) -> stacked tap-major (Cp, K*Cp), bf16,
    # zero-padded channels (zero columns/rows contribute nothing to the matmul).
    def stack_w(w, K):
        wp = jnp.zeros((Cp, K, Cp), jnp.float32)
        wp = wp.at[:C, :, :C].set(jnp.transpose(w.astype(jnp.float32), (0, 2, 1)))
        return wp.reshape(Cp, K * Cp).astype(jnp.bfloat16)

    def pad_vec(v):
        return jnp.pad(v.astype(jnp.float32).reshape(C, 1), ((0, Cp - C), (0, 0)))

    w1s = stack_w(params["w1"], k1)
    w2s = stack_w(params["w2"], K2)
    g1, be1 = pad_vec(params["g1"]), pad_vec(params["be1"])
    g2, be2 = pad_vec(params["g2"]), pad_vec(params["be2"])
    # NOTE: conv biases b1/b2 are omitted — a per-channel bias is exactly cancelled
    # by the train-mode (batch-statistics) BatchNorm that immediately follows each
    # conv.  (Eval-mode/running-stats BN is NOT what this kernel implements.)

    kernel = functools.partial(
        _resnet_block1d_kernel,
        k1=k1, pad=padding, maxpad=maxpad, n_valid=N * L, eps=eps)

    # --------- generation-aware VMEM budget (grid-less: no double buffering) ------
    bytes_in = (4 * xflat.size + 4 * mask.size + 2 * (w1s.size + w2s.size)
                + 4 * (g1.size + be1.size + g2.size + be2.size))
    bytes_out = 4 * Cp * Wc
    bytes_scratch = 2 * Kmax * Cp * Wc
    bytes_temps = 3 * 4 * Cp * Wc        # acc1/acc2/h-style compiler temporaries
    vmem_resident = bytes_in + bytes_out + bytes_scratch + bytes_temps
    vmem_cap = _vmem_capacity_bytes()
    assert vmem_resident < int(0.85 * vmem_cap), (
        "problem too large for the grid-less ResnetBlock1d kernel; tile over Wc")
    vmem_limit = int(min(vmem_cap, max(vmem_resident * 3 // 2, 32 * 1024 * 1024)))

    flops = 2 * Wc * Cp * Cp * (k1 + K2)
    bytes_accessed = bytes_in + bytes_out

    out_flat = pl.pallas_call(
        kernel,
        out_shape=jax.ShapeDtypeStruct((Cp, Wc), jnp.float32),
        scratch_shapes=[pltpu.VMEM((Kmax * Cp, Wc), jnp.bfloat16)],
        compiler_params=pltpu.CompilerParams(vmem_limit_bytes=vmem_limit),
        cost_estimate=pl.CostEstimate(
            flops=flops, transcendentals=0, bytes_accessed=bytes_accessed),
    )(xflat, mask, w1s, g1, be1, w2s, g2, be2)

    # (Cp, Wc) -> (N, C, L): drop padded channels and junk columns.
    out = out_flat[:C, :w_valid].reshape(C, N, B)[:, :, :L]
    return jnp.transpose(out, (1, 0, 2))


# ------------------------------ pure-JAX reference ----------------------------------
def _reference(x, params, *, kernel_size, padding, eps=1e-5):
    def conv1d(h, w, b, pad):
        Nn, Cc, Ll = h.shape
        K = w.shape[2]
        hp = jnp.pad(h, ((0, 0), (0, 0), (pad, pad)))
        out = jnp.zeros((Nn, w.shape[0], Ll), jnp.float32)
        for k in range(K):
            out = out + jnp.einsum("oc,ncl->nol", w[:, :, k], hp[:, :, k:k + Ll],
                                   precision=jax.lax.Precision.HIGHEST)
        return out + b[None, :, None]

    def bn(h, g, be):
        m = h.mean(axis=(0, 2), keepdims=True)
        v = ((h - m) ** 2).mean(axis=(0, 2), keepdims=True)
        return (h - m) / jnp.sqrt(v + eps) * g[None, :, None] + be[None, :, None]

    h = conv1d(x, params["w1"], params["b1"], padding)
    h = jax.nn.relu(bn(h, params["g1"], params["be1"]))
    h = conv1d(h, params["w2"], params["b2"], 2)
    h = bn(h, params["g2"], params["be2"])
    return h + x


if __name__ == "__main__":
    # Small shapes consistent with the module: ResnetBlock1d(C, C, padding=1, kernel=3)
    N, C, L = 2, 4, 16
    kernel_size, padding = 3, 1

    key = jax.random.PRNGKey(0)
    keys = jax.random.split(key, 9)
    x = jax.random.normal(keys[0], (N, C, L), jnp.float32)

    params = dict(
        w1=0.2 * jax.random.normal(keys[1], (C, C, kernel_size), jnp.float32),
        b1=0.1 * jax.random.normal(keys[2], (C,), jnp.float32),
        g1=1.0 + 0.1 * jax.random.normal(keys[3], (C,), jnp.float32),
        be1=0.1 * jax.random.normal(keys[4], (C,), jnp.float32),
        w2=0.2 * jax.random.normal(keys[5], (C, C, 5), jnp.float32),
        b2=0.1 * jax.random.normal(keys[6], (C,), jnp.float32),
        g2=1.0 + 0.1 * jax.random.normal(keys[7], (C,), jnp.float32),
        be2=0.1 * jax.random.normal(keys[8], (C,), jnp.float32),
    )

    out = resnet_block1d(x, params, kernel_size=kernel_size, padding=padding)
    out = jax.block_until_ready(out)

    ref = _reference(x, params, kernel_size=kernel_size, padding=padding)
    ref = jax.block_until_ready(ref)

    assert out.shape == (N, C, L)
    max_err = float(jnp.max(jnp.abs(out - ref)))
    # bf16 MXU operands (f32 accumulation + exact f32 residual) => activation-level
    # error is ~1e-2 scale, so the tolerance is loosened from the f32 kernel's 1e-4.
    assert max_err < 7e-2, f"mismatch vs reference: {max_err}"
    print("KERNEL_OK")
</pallas_src>

<mosaic_0001>
module attributes {stable_mosaic.version = 11 : i64} {
  func.func @_resnet_block1d_kernel(%arg0: memref<16x132xf32, #tpu.memory_space<vmem>>, %arg1: memref<1x128xf32, #tpu.memory_space<vmem>>, %arg2: memref<16x48xbf16, #tpu.memory_space<vmem>>, %arg3: memref<16x1xf32, #tpu.memory_space<vmem>>, %arg4: memref<16x1xf32, #tpu.memory_space<vmem>>, %arg5: memref<16x80xbf16, #tpu.memory_space<vmem>>, %arg6: memref<16x1xf32, #tpu.memory_space<vmem>>, %arg7: memref<16x1xf32, #tpu.memory_space<vmem>>, %arg8: memref<16x128xf32, #tpu.memory_space<vmem>>, %arg9: memref<80x128xbf16, #tpu.memory_space<vmem>>) attributes {dimension_semantics = [], scalar_prefetch = 0 : i64, scratch_operands = 1 : i64, tpu.core_type = #tpu.core_type<tc>} {
    %c0 = arith.constant 0 : index
    %c0_0 = arith.constant 0 : index
    %0 = vector.load %arg1[%c0, %c0_0] : memref<1x128xf32, #tpu.memory_space<vmem>>, vector<1x128xf32>
    %c0_1 = arith.constant 0 : index
    %c1 = arith.constant 1 : index
    %1 = vector.load %arg0[%c0_1, %c1] : memref<16x132xf32, #tpu.memory_space<vmem>>, vector<16x128xf32>
    %2 = arith.truncf %1 : vector<16x128xf32> to vector<16x128xbf16>
    %c0_2 = arith.constant 0 : index
    %c0_3 = arith.constant 0 : index
    %3 = vector.load %arg9[%c0_2, %c0_3] : memref<80x128xbf16, #tpu.memory_space<vmem>>, vector<16x128xbf16>
    tpu.vector_store %arg9[%c0_2, %c0_3], %2 {strides = array<i32>} : memref<80x128xbf16, #tpu.memory_space<vmem>>, vector<16x128xbf16>,
    %c0_4 = arith.constant 0 : index
    %c2 = arith.constant 2 : index
    %4 = vector.load %arg0[%c0_4, %c2] : memref<16x132xf32, #tpu.memory_space<vmem>>, vector<16x128xf32>
    %5 = arith.truncf %4 : vector<16x128xf32> to vector<16x128xbf16>
    %c16 = arith.constant 16 : index
    %c0_5 = arith.constant 0 : index
    %6 = vector.load %arg9[%c16, %c0_5] : memref<80x128xbf16, #tpu.memory_space<vmem>>, vector<16x128xbf16>
    tpu.vector_store %arg9[%c16, %c0_5], %5 {strides = array<i32>} : memref<80x128xbf16, #tpu.memory_space<vmem>>, vector<16x128xbf16>,
    %c0_6 = arith.constant 0 : index
    %c3 = arith.constant 3 : index
    %7 = vector.load %arg0[%c0_6, %c3] : memref<16x132xf32, #tpu.memory_space<vmem>>, vector<16x128xf32>
    %8 = arith.truncf %7 : vector<16x128xf32> to vector<16x128xbf16>
    %c32 = arith.constant 32 : index
    %c0_7 = arith.constant 0 : index
    %9 = vector.load %arg9[%c32, %c0_7] : memref<80x128xbf16, #tpu.memory_space<vmem>>, vector<16x128xbf16>
    tpu.vector_store %arg9[%c32, %c0_7], %8 {strides = array<i32>} : memref<80x128xbf16, #tpu.memory_space<vmem>>, vector<16x128xbf16>,
    %c0_8 = arith.constant 0 : index
    %c0_9 = arith.constant 0 : index
    %10 = vector.load %arg2[%c0_8, %c0_9] : memref<16x48xbf16, #tpu.memory_space<vmem>>, vector<16x48xbf16>
    %c0_10 = arith.constant 0 : index
    %c0_11 = arith.constant 0 : index
    %11 = vector.load %arg9[%c0_10, %c0_11] : memref<80x128xbf16, #tpu.memory_space<vmem>>, vector<48x128xbf16>
    %cst = arith.constant dense<0.000000e+00> : vector<16x128xf32>
    %12 = tpu.matmul %10, %11, %cst {dimension_numbers = #tpu.dot_dimension_numbers<[1], [0], [0], [1], [0, 0, 1, 1], [], []>} : vector<16x48xbf16>, vector<48x128xbf16>, vector<16x128xf32> -> vector<16x128xf32>
    %13 = vector.broadcast %0 : vector<1x128xf32> to vector<16x128xf32>
    %14 = arith.mulf %12, %13 : vector<16x128xf32>
    %cst_12 = arith.constant dense<0.000000e+00> : vector<16xf32>
    %15 = vector.multi_reduction <add>, %14, %cst_12 [1] : vector<16x128xf32> to vector<16xf32>
    %16 = vector.shape_cast %15 : vector<16xf32> to vector<16x1xf32>
    %cst_13 = arith.constant 3.125000e-02 : f32
    %17 = vector.broadcast %cst_13 : f32 to vector<16x1xf32>
    %18 = arith.mulf %16, %17 : vector<16x1xf32>
    %19 = arith.mulf %14, %14 : vector<16x128xf32>
    %cst_14 = arith.constant dense<0.000000e+00> : vector<16xf32>
    %20 = vector.multi_reduction <add>, %19, %cst_14 [1] : vector<16x128xf32> to vector<16xf32>
    %21 = vector.shape_cast %20 : vector<16xf32> to vector<16x1xf32>
    %cst_15 = arith.constant 3.125000e-02 : f32
    %22 = vector.broadcast %cst_15 : f32 to vector<16x1xf32>
    %23 = arith.mulf %21, %22 : vector<16x1xf32>
    %24 = arith.mulf %18, %18 : vector<16x1xf32>
    %25 = arith.subf %23, %24 : vector<16x1xf32>
    %c0_16 = arith.constant 0 : index
    %c0_17 = arith.constant 0 : index
    %26 = vector.load %arg3[%c0_16, %c0_17] : memref<16x1xf32, #tpu.memory_space<vmem>>, vector<16x1xf32>
    %cst_18 = arith.constant 9.99999974E-6 : f32
    %27 = vector.broadcast %cst_18 : f32 to vector<16x1xf32>
    %28 = arith.addf %25, %27 : vector<16x1xf32>
    %29 = math.rsqrt %28 : vector<16x1xf32>
    %30 = arith.mulf %26, %29 : vector<16x1xf32>
    %c0_19 = arith.constant 0 : index
    %c0_20 = arith.constant 0 : index
    %31 = vector.load %arg4[%c0_19, %c0_20] : memref<16x1xf32, #tpu.memory_space<vmem>>, vector<16x1xf32>
    %32 = arith.mulf %18, %30 : vector<16x1xf32>
    %33 = arith.subf %31, %32 : vector<16x1xf32>
    %34 = vector.broadcast %30 : vector<16x1xf32> to vector<16x128xf32>
    %35 = arith.mulf %12, %34 : vector<16x128xf32>
    %36 = vector.broadcast %33 : vector<16x1xf32> to vector<16x128xf32>
    %37 = arith.addf %35, %36 : vector<16x128xf32>
    %cst_21 = arith.constant 0.000000e+00 : f32
    %38 = vector.broadcast %cst_21 : f32 to vector<16x128xf32>
    %39 = arith.maximumf %37, %38 : vector<16x128xf32>
    %40 = vector.broadcast %0 : vector<1x128xf32> to vector<16x128xf32>
    %41 = arith.mulf %39, %40 : vector<16x128xf32>
    %42 = arith.truncf %41 : vector<16x128xf32> to vector<16x128xbf16>
    %cst_22 = arith.constant 0.000000e+00 : bf16
    %43 = vector.broadcast %cst_22 : bf16 to vector<16x2xbf16>
    %c0_23 = arith.constant 0 : index
    %c0_24 = arith.constant 0 : index
    %44 = vector.load %arg9[%c0_23, %c0_24] : memref<80x128xbf16, #tpu.memory_space<vmem>>, vector<16x2xbf16>
    tpu.vector_store %arg9[%c0_23, %c0_24], %43 {strides = array<i32>} : memref<80x128xbf16, #tpu.memory_space<vmem>>, vector<16x2xbf16>,
    %45 = vector.extract_strided_slice %42 {offsets = [0, 0], sizes = [16, 126], strides = [1, 1]} : vector<16x128xbf16> to vector<16x126xbf16>
    %c0_25 = arith.constant 0 : index
    %c2_26 = arith.constant 2 : index
    %46 = vector.load %arg9[%c0_25, %c2_26] : memref<80x128xbf16, #tpu.memory_space<vmem>>, vector<16x126xbf16>
    tpu.vector_store %arg9[%c0_25, %c2_26], %45 {strides = array<i32>} : memref<80x128xbf16, #tpu.memory_space<vmem>>, vector<16x126xbf16>,
    %cst_27 = arith.constant 0.000000e+00 : bf16
    %47 = vector.broadcast %cst_27 : bf16 to vector<16x1xbf16>
    %c16_28 = arith.constant 16 : index
    %c0_29 = arith.constant 0 : index
    %48 = vector.load %arg9[%c16_28, %c0_29] : memref<80x128xbf16, #tpu.memory_space<vmem>>, vector<16x1xbf16>
    tpu.vector_store %arg9[%c16_28, %c0_29], %47 {strides = array<i32>} : memref<80x128xbf16, #tpu.memory_space<vmem>>, vector<16x1xbf16>,
    %49 = vector.extract_strided_slice %42 {offsets = [0, 0], sizes = [16, 127], strides = [1, 1]} : vector<16x128xbf16> to vector<16x127xbf16>
    %c16_30 = arith.constant 16 : index
    %c1_31 = arith.constant 1 : index
    %50 = vector.load %arg9[%c16_30, %c1_31] : memref<80x128xbf16, #tpu.memory_space<vmem>>, vector<16x127xbf16>
    tpu.vector_store %arg9[%c16_30, %c1_31], %49 {strides = array<i32>} : memref<80x128xbf16, #tpu.memory_space<vmem>>, vector<16x127xbf16>,
    %c32_32 = arith.constant 32 : index
    %c0_33 = arith.constant 0 : index
    %51 = vector.load %arg9[%c32_32, %c0_33] : memref<80x128xbf16, #tpu.memory_space<vmem>>, vector<16x128xbf16>
    tpu.vector_store %arg9[%c32_32, %c0_33], %42 {strides = array<i32>} : memref<80x128xbf16, #tpu.memory_space<vmem>>, vector<16x128xbf16>,
    %52 = vector.extract_strided_slice %42 {offsets = [0, 1], sizes = [16, 127], strides = [1, 1]} : vector<16x128xbf16> to vector<16x127xbf16>
    %c48 = arith.constant 48 : index
    %c0_34 = arith.constant 0 : index
    %53 = vector.load %arg9[%c48, %c0_34] : memref<80x128xbf16, #tpu.memory_space<vmem>>, vector<16x127xbf16>
    tpu.vector_store %arg9[%c48, %c0_34], %52 {strides = array<i32>} : memref<80x128xbf16, #tpu.memory_space<vmem>>, vector<16x127xbf16>,
    %cst_35 = arith.constant 0.000000e+00 : bf16
    %54 = vector.broadcast %cst_35 : bf16 to vector<16x1xbf16>
    %c48_36 = arith.constant 48 : index
    %c127 = arith.constant 127 : index
    %55 = vector.load %arg9[%c48_36, %c127] : memref<80x128xbf16, #tpu.memory_space<vmem>>, vector<16x1xbf16>
    tpu.vector_store %arg9[%c48_36, %c127], %54 {strides = array<i32>} : memref<80x128xbf16, #tpu.memory_space<vmem>>, vector<16x1xbf16>,
    %56 = vector.extract_strided_slice %42 {offsets = [0, 2], sizes = [16, 126], strides = [1, 1]} : vector<16x128xbf16> to vector<16x126xbf16>
    %c64 = arith.constant 64 : index
    %c0_37 = arith.constant 0 : index
    %57 = vector.load %arg9[%c64, %c0_37] : memref<80x128xbf16, #tpu.memory_space<vmem>>, vector<16x126xbf16>
    tpu.vector_store %arg9[%c64, %c0_37], %56 {strides = array<i32>} : memref<80x128xbf16, #tpu.memory_space<vmem>>, vector<16x126xbf16>,
    %cst_38 = arith.constant 0.000000e+00 : bf16
    %58 = vector.broadcast %cst_38 : bf16 to vector<16x2xbf16>
    %c64_39 = arith.constant 64 : index
    %c126 = arith.constant 126 : index
    %59 = vector.load %arg9[%c64_39, %c126] : memref<80x128xbf16, #tpu.memory_space<vmem>>, vector<16x2xbf16>
    tpu.vector_store %arg9[%c64_39, %c126], %58 {strides = array<i32>} : memref<80x128xbf16, #tpu.memory_space<vmem>>, vector<16x2xbf16>,
    %c0_40 = arith.constant 0 : index
    %c0_41 = arith.constant 0 : index
    %60 = vector.load %arg5[%c0_40, %c0_41] : memref<16x80xbf16, #tpu.memory_space<vmem>>, vector<16x80xbf16>
    %c0_42 = arith.constant 0 : index
    %c0_43 = arith.constant 0 : index
    %61 = vector.load %arg9[%c0_42, %c0_43] : memref<80x128xbf16, #tpu.memory_space<vmem>>, vector<80x128xbf16>
    %cst_44 = arith.constant dense<0.000000e+00> : vector<16x128xf32>
    %62 = tpu.matmul %60, %61, %cst_44 {dimension_numbers = #tpu.dot_dimension_numbers<[1], [0], [0], [1], [0, 0, 1, 1], [], []>} : vector<16x80xbf16>, vector<80x128xbf16>, vector<16x128xf32> -> vector<16x128xf32>
    %63 = vector.broadcast %0 : vector<1x128xf32> to vector<16x128xf32>
    %64 = arith.mulf %62, %63 : vector<16x128xf32>
    %cst_45 = arith.constant dense<0.000000e+00> : vector<16xf32>
    %65 = vector.multi_reduction <add>, %64, %cst_45 [1] : vector<16x128xf32> to vector<16xf32>
    %66 = vector.shape_cast %65 : vector<16xf32> to vector<16x1xf32>
    %cst_46 = arith.constant 3.125000e-02 : f32
    %67 = vector.broadcast %cst_46 : f32 to vector<16x1xf32>
    %68 = arith.mulf %66, %67 : vector<16x1xf32>
    %69 = arith.mulf %64, %64 : vector<16x128xf32>
    %cst_47 = arith.constant dense<0.000000e+00> : vector<16xf32>
    %70 = vector.multi_reduction <add>, %69, %cst_47 [1] : vector<16x128xf32> to vector<16xf32>
    %71 = vector.shape_cast %70 : vector<16xf32> to vector<16x1xf32>
    %cst_48 = arith.constant 3.125000e-02 : f32
    %72 = vector.broadcast %cst_48 : f32 to vector<16x1xf32>
    %73 = arith.mulf %71, %72 : vector<16x1xf32>
    %74 = arith.mulf %68, %68 : vector<16x1xf32>
    %75 = arith.subf %73, %74 : vector<16x1xf32>
    %c0_49 = arith.constant 0 : index
    %c0_50 = arith.constant 0 : index
    %76 = vector.load %arg6[%c0_49, %c0_50] : memref<16x1xf32, #tpu.memory_space<vmem>>, vector<16x1xf32>
    %cst_51 = arith.constant 9.99999974E-6 : f32
    %77 = vector.broadcast %cst_51 : f32 to vector<16x1xf32>
    %78 = arith.addf %75, %77 : vector<16x1xf32>
    %79 = math.rsqrt %78 : vector<16x1xf32>
    %80 = arith.mulf %76, %79 : vector<16x1xf32>
    %c0_52 = arith.constant 0 : index
    %c0_53 = arith.constant 0 : index
    %81 = vector.load %arg7[%c0_52, %c0_53] : memref<16x1xf32, #tpu.memory_space<vmem>>, vector<16x1xf32>
    %82 = arith.mulf %68, %80 : vector<16x1xf32>
    %83 = arith.subf %81, %82 : vector<16x1xf32>
    %84 = vector.broadcast %80 : vector<16x1xf32> to vector<16x128xf32>
    %85 = arith.mulf %62, %84 : vector<16x128xf32>
    %86 = vector.broadcast %83 : vector<16x1xf32> to vector<16x128xf32>
    %87 = arith.addf %85, %86 : vector<16x128xf32>
    %c0_54 = arith.constant 0 : index
    %c2_55 = arith.constant 2 : index
    %88 = vector.load %arg0[%c0_54, %c2_55] : memref<16x132xf32, #tpu.memory_space<vmem>>, vector<16x128xf32>
    %89 = arith.addf %87, %88 : vector<16x128xf32>
    %c0_56 = arith.constant 0 : index
    %c0_57 = arith.constant 0 : index
    %90 = vector.load %arg8[%c0_56, %c0_57] : memref<16x128xf32, #tpu.memory_space<vmem>>, vector<16x128xf32>
    tpu.vector_store %arg8[%c0_56, %c0_57], %89 {strides = array<i32>} : memref<16x128xf32, #tpu.memory_space<vmem>>, vector<16x128xf32>,
    return
  }
}

</mosaic_0001>

<bundles_post_ra>
// kernel: tpu_custom_call.1
= control target key start
LH: loop header
LB: loop body
LE: loop exit
PB: predicated region body
PF: predicated region fallthrough
CT: control target
= control target key end

     0   :  { %v626_v5 = vmov 0   ;;  %s627_s13 = smov 125   ;;  %s628_s14 = smov 126   ;;  %s792_s0 = inlined_call_operand.vmem [shape: f32[16,132], index: 0, kind: input, shape index: {}]   ;;  %s793_s1 = inlined_call_operand.vmem [shape: f32[1,128], index: 1, kind: input, shape index: {}]   ;;  %s794_s2 = inlined_call_operand.vmem [shape: bf16[16,48], index: 2, kind: input, shape index: {}]   ;;  %s795_s3 = inlined_call_operand.vmem [shape: f32[16,1], index: 3, kind: input, shape index: {}]   ;;  %s796_s4 = inlined_call_operand.vmem [shape: f32[16,1], index: 4, kind: input, shape index: {}]   ;;  %s797_s5 = inlined_call_operand.vmem [shape: bf16[16,80], index: 5, kind: input, shape index: {}]   ;;  %s798_s6 = inlined_call_operand.vmem [shape: f32[16,1], index: 6, kind: input, shape index: {}]   ;;  %s799_s7 = inlined_call_operand.vmem [shape: f32[16,1], index: 7, kind: input, shape index: {}]   ;;  %s800_s8 = inlined_call_operand.hbm [shape: f32[16,128], index: 8, kind: output, shape index: {}]  }
   0x1   :  { %v685_v0 = vld [vmem:[%s792_s0] sm:$0xff]  ;;  %v690_v1 = vld [vmem:[%s792_s0 + $0x8] sm:$0xff]  ;;  %v695_v2 = vld [vmem:[%s792_s0 + $0x10] sm:$0xff]  ;;  %586 = vset.pattern.permute.xlu1 %v626_v5  ;;  %587 = vset.pattern.permute.xlu0 %v626_v5 }
   0x2   :  { %v531_v3 = vpack.c.bf16 %v690_v1, %v685_v0  ;;  %v702_v4 = vld [vmem:[%s792_s0 + $0x18] sm:$0xff] }
   0x3   :  { %v532_v6 = vpack.c.bf16 %v702_v4, %v695_v2 }
   0x4   :  { %100 = vrot.lane.b32.xlu0 %v531_v3, %s627_s13  ;;  %73 = vrot.lane.b32.xlu1 %v531_v3, %s628_s14 }
   0x5   :  { %13 = vsyncpa [#allocation4], 0  ;;  %v629_v7 = vmov 0.0   ;;  %s630_s0 = smov 127   ;;  %vm631_vm0 = vmmov 0   ;;  %vm106_vm1 = vcmask 1022976  }
   0x6   :  { %551 = vmatprep.subr.bf16.mxu0 %v629_v7  ;;  %561 = vmatprep.subr.bf16.mxu1 %v629_v7  ;;  %vm79_vm2 = vcmask 1031168   ;;  %vm52_vm3 = vcmask 1039360   ;;  %vm275_vm4 = vcmask 3072   ;;  %vm258_vm5 = vcmask 11264   ;;  %v589_v33 = vld [vmem:[%s794_s2] sm:$0xff]   ;;  %v216_v61 = vld [vmem:[%s795_s3 + $0x8] sm:$0xff] }
   0x7   :  { %557 = vmatprep.mubr.msk.bf16.mxu0 %vm631_vm0, %v629_v7  ;;  %571 = vmatprep.mubr.msk.bf16.mxu1 %vm631_vm0, %v629_v7  ;;  %vm144_vm6 = vcmask 392192   ;;  %v730_v34 = vld [vmem:[%s793_s1] ss:$0 sm:$0xff]  ;;  %vm272_vm7 = vcmask 1043472   ;;  %vm309_vm8 = vcmask 1027072   ;;  %vm312_vm9 = vcmask 1044464  }
   0x8   :  { %102 = vrot.lane.b32.xlu0 %v532_v6, %s627_s13  ;;  %75 = vrot.lane.b32.xlu1 %v532_v6, %s628_s14  ;;  %v215_v57 = vld [vmem:[%s795_s3] sm:$0xff]  ;;  %s632_s3 = smov 2   ;;  %vm297_vm10 = vcmask 1035264   ;;  %vm300_vm11 = vcmask 1044472   ;;  %vm284_vm12 = vcmask 1043464   ;;  %vm362_vm13 = vcmask 654336  }
   0x9   :  { %v223_v60 = vld [vmem:[%s796_s4] sm:$0xff] }
   0xc   :  { %48 = vrot.lane.b32.xlu1 %v532_v6, %s630_s0  ;;  %46 = vrot.lane.b32.xlu0 %v531_v3, %s630_s0 }
  0x76   :  { %v101_v8 = vpop.permute.xlu0 %100  ;;  %v74_v9 = vpop.permute.xlu1 %73 }
  0x77   :  { %v104_v10 = vrot.slane %v101_v8, 4  ;;  %v77_v11 = vrot.slane %v74_v9, 4 }
  0x79   :  { %v107_v12 = vsel %vm106_vm1, %v101_v8, %v104_v10  ;;  %v80_v13 = vsel %vm79_vm2, %v74_v9, %v77_v11  ;;  %v224_v8 = vld [vmem:[%s796_s4 + $0x8] sm:$0xff]  ;;  %s633_s4 = smov 1  }
  0x7a   :  { %111 = vst [vmem:[#allocation2 + $0x10] sm:$0xf] %v107_v12  ;;  %84 = vst [vmem:[#allocation2 + $0x8] sm:$0xf] %v80_v13  ;;  %v103_v14 = vpop.permute.xlu0 %102  ;;  %v76_v15 = vpop.permute.xlu1 %75 }
  0x7b   :  { %v105_v16 = vrot.slane %v103_v14, 4  ;;  %v78_v17 = vrot.slane %v76_v15, 4 }
  0x7d   :  { %v108_v18 = vsel %vm106_vm1, %v103_v14, %v105_v16  ;;  %v81_v19 = vsel %vm79_vm2, %v76_v15, %v78_v17 }
  0x7e   :  { %112 = vst [vmem:[#allocation2 + $0x14] sm:$0xf] %v108_v18  ;;  %85 = vst [vmem:[#allocation2 + $0xc] sm:$0xf] %v81_v19  ;;  %v49_v20 = vpop.permute.xlu1 %48  ;;  %v47_v21 = vpop.permute.xlu0 %46 }
  0x7f   :  { %v51_v22 = vrot.slane %v49_v20, 4  ;;  %v50_v23 = vrot.slane %v47_v21, 4 }
  0x81   :  { %v117_v24 = vld [vmem:[#allocation2 + $0x8] sm:$0xf]  ;;  %v54_v25 = vsel %vm52_vm3, %v49_v20, %v51_v22  ;;  %v53_v26 = vsel %vm52_vm3, %v47_v21, %v50_v23 }
  0x82   :  { %276 = vst.msk [vmem:[#allocation2 + $0x8] sm:$0xf] %vm275_vm4, %v626_v5  ;;  %58 = vst [vmem:[#allocation2 + $0x4] sm:$0xf] %v54_v25 }
  0x83   :  { %57 = vst [vmem:[#allocation2] sm:$0xf] %v53_v26 }
  0x85   :  { %v118_v27 = vld [vmem:[#allocation2 + $0xc] sm:$0xf]  ;;  %v588_v28 = vld [vmem:[#allocation2 + $0x10] sm:$0xff]  }
  0x86   :  { %277 = vst.msk [vmem:[#allocation2 + $0xc] sm:$0xf] %vm275_vm4, %v626_v5  ;;  %552 = vmatpush3.bf16.msra.mxu0 %v588_v28  ;;  %v514_v31 = vcombine.low %v117_v24, %v118_v27 }
  0x87   :  { %553 = vmatprep.subr.bf16.mxu0 %v629_v7 }
  0x89   :  { %v116_v29 = vld [vmem:[#allocation2 + $0x4] sm:$0xf] }
  0x8a   :  { %v115_v30 = vld [vmem:[#allocation2] sm:$0xf]  ;;  %260 = vst.msk [vmem:[#allocation2 + $0x4] sm:$0xf] %vm258_vm5, %v626_v5  ;;  %554 = vmatpush3.bf16.msra.mxu0 %v514_v31 }
  0x8b   :  { %259 = vst.msk [vmem:[#allocation2] sm:$0xf] %vm258_vm5, %v626_v5  ;;  %555 = vmatprep.subr.bf16.mxu0 %v629_v7  ;;  %v513_v32 = vcombine.low %v115_v30, %v116_v29 }
  0x8e   :  { %556 = vmatpush3.bf16.msra.mxu0 %v513_v32 }
  0x91   :  { %558 = vmatmul.mubr.msk.bf16.vlgmr.msra.gmra.mxu0 %vm144_vm6, %v589_v33 }
 0x151   :  { %v182_v35 = vpop.f32.mrf.mxu0 }
 0x152   :  { %v195_v36 = vmul.f32 %v730_v34, %v182_v35 }
 0x153   :  { %v559_v37 = vpop.f32.mrf.mxu0 }
 0x154   :  { %197 = vadd.xlane.f32.xlu0 %v195_v36  ;;  %v203_v40 = vmul.f32 %v195_v36, %v195_v36 }
 0x155   :  { %v185_v38 = vpop.f32.mrf.mxu0 }
 0x156   :  { %v196_v39 = vmul.f32 %v730_v34, %v185_v38 }
 0x157   :  { %v560_v41 = vpop.f32.mrf.mxu0 }
 0x158   :  { %199 = vadd.xlane.f32.xlu1 %v196_v39  ;;  %205 = vadd.xlane.f32.xlu0 %v203_v40  ;;  %v204_v42 = vmul.f32 %v196_v39, %v196_v39  ;;  %v595_v39 = vld [vmem:[%s797_s5] sm:$0xff]  }
 0x15c   :  { %207 = vadd.xlane.f32.xlu0 %v204_v42 }
 0x1dd   :  { %v198_v43 = vpop.xlane.xlu0 %197 }
 0x1de   :  { %v201_v44 = vmul.f32 0.03125, %v198_v43 }
 0x1e0   :  { %v211_v47 = vmul.f32 %v201_v44, %v201_v44 }
 0x1e1   :  { %v200_v45 = vpop.xlane.xlu1 %199  ;;  %v206_v46 = vpop.xlane.xlu0 %205 }
 0x1e2   :  { %v202_v48 = vmul.f32 0.03125, %v200_v45  ;;  %v209_v49 = vmul.f32 0.03125, %v206_v46 }
 0x1e4   :  { %v213_v50 = vsub.f32 %v209_v49, %v211_v47  ;;  %v212_v52 = vmul.f32 %v202_v48, %v202_v48 }
 0x1e5   :  { %v208_v51 = vpop.xlane.xlu0 %207 }
 0x1e6   :  { %v217_v53 = vadd.f32 1e-05, %v213_v50  ;;  %v210_v54 = vmul.f32 0.03125, %v208_v51 }
 0x1e8   :  { %596 = vrsqrt.f32 %v217_v53  ;;  %v214_v55 = vsub.f32 %v210_v54, %v212_v52 }
 0x1ea   :  { %v218_v56 = vadd.f32 1e-05, %v214_v55 }
 0x1ec   :  { %598 = vrsqrt.f32 %v218_v56 }
 0x1f5   :  { %v597_v58 = vpop.eup %596 }
 0x1f6   :  { %v221_v59 = vmul.f32 %v597_v58, %v215_v57 }
 0x1f8   :  { %231 = vperm.xlu1 %586, %v221_v59   ;;  %v225_v62 = vmul.f32 %v221_v59, %v201_v44 }
 0x1f9   :  { %v599_v63 = vpop.eup %598 }
 0x1fa   :  { %v227_v3 = vsub.f32 %v223_v60, %v225_v62  ;;  %v222_v6 = vmul.f32 %v599_v63, %v216_v61  ;;  %v435_v62 = vld [vmem:[%s799_s7] sm:$0xff]  ;;  %v428_v63 = vld [vmem:[%s798_s6 + $0x8] sm:$0xff] }
 0x1fc   :  { %243 = vperm.xlu1 %586, %v227_v3   ;;  %236 = vperm.xlu0 %587, %v222_v6   ;;  %v226_v9 = vmul.f32 %v222_v6, %v202_v48 }
 0x1fe   :  { %v228_v10 = vsub.f32 %v224_v8, %v226_v9 }
 0x200   :  { %248 = vperm.xlu1 %586, %v228_v10   ;;  %v436_v10 = vld [vmem:[%s799_s7 + $0x8] sm:$0xff] }
 0x273   :  { %v232_v11 = vpop.permute.xlu1 %231 }
 0x274   :  { %v239_v12 = vmul.f32 %v232_v11, %v182_v35 }
 0x277   :  { %v244_v13 = vpop.permute.xlu1 %243  ;;  %v237_v14 = vpop.permute.xlu0 %236 }
 0x278   :  { %v251_v15 = vadd.f32 %v244_v13, %v239_v12  ;;  %v240_v17 = vmul.f32 %v237_v14, %v185_v38 }
 0x27a   :  { %v253_v16 = vmax.f32 %v251_v15, 0.0 }
 0x27b   :  { %v249_v18 = vpop.permute.xlu1 %248 }
 0x27c   :  { %v255_v19 = vmul.f32 %v730_v34, %v253_v16  ;;  %v252_v20 = vadd.f32 %v249_v18, %v240_v17 }
 0x27e   :  { %v533_v21 = vpack.c.bf16 %v255_v19, %v255_v19  ;;  %v254_v22 = vmax.f32 %v252_v20, 0.0 }
 0x280   :  { %v256_v23 = vmul.f32 %v730_v34, %v254_v22  ;;  %266 = vrot.lane.b32.xlu0 %v533_v21, %s632_s3  ;;  %303 = vrot.lane.b32.xlu1 %v533_v21, %s628_s14 }
 0x282   :  { %v538_v24 = vpack.c.bf16 %v256_v23, %v255_v19  ;;  %v534_v25 = vpack.c.bf16 %v256_v23, %v256_v23 }
 0x284   :  { %540 = vst [vmem:[#allocation2 + $0x10] sm:$0xff] %v538_v24   ;;  %291 = vrot.lane.b32.xlu1 %v533_v21, %s630_s0 }
 0x288   :  { %305 = vrot.lane.b32.xlu1 %v534_v25, %s628_s14 }
 0x28b   :  { %v592_v37 = vld [vmem:[#allocation2 + $0x10] sm:$0xff]  }
 0x28c   :  { %293 = vrot.lane.b32.xlu1 %v534_v25, %s630_s0 }
 0x290   :  { %278 = vrot.lane.b32.xlu1 %v533_v21, %s633_s4 }
 0x294   :  { %280 = vrot.lane.b32.xlu1 %v534_v25, %s633_s4 }
 0x298   :  { %268 = vrot.lane.b32.xlu1 %v534_v25, %s632_s3 }
 0x2f2   :  { %v267_v26 = vpop.permute.xlu0 %266  ;;  %v304_v27 = vpop.permute.xlu1 %303 }
 0x2f3   :  { %273 = vst.msk [vmem:[#allocation2] sm:$0xf] %vm272_vm7, %v267_v26 }
 0x2f4   :  { %310 = vst.msk [vmem:[#allocation2 + $0x20] sm:$0xf] %vm309_vm8, %v304_v27 }
 0x2f5   :  { %313 = vst.msk [vmem:[#allocation2 + $0x20] sm:$0xf] %vm312_vm9, %v626_v5 }
 0x2f6   :  { %v292_v28 = vpop.permute.xlu1 %291 }
 0x2f7   :  { %298 = vst.msk [vmem:[#allocation2 + $0x18] sm:$0xf] %vm297_vm10, %v292_v28 }
 0x2f8   :  { %301 = vst.msk [vmem:[#allocation2 + $0x18] sm:$0xf] %vm300_vm11, %v626_v5 }
 0x2fa   :  { %v306_v29 = vpop.permute.xlu1 %305 }
 0x2fb   :  { %311 = vst.msk [vmem:[#allocation2 + $0x24] sm:$0xf] %vm309_vm8, %v306_v29 }
 0x2fc   :  { %314 = vst.msk [vmem:[#allocation2 + $0x24] sm:$0xf] %vm312_vm9, %v626_v5 }
 0x2fe   :  { %v294_v30 = vpop.permute.xlu1 %293 }
 0x2ff   :  { %299 = vst.msk [vmem:[#allocation2 + $0x1c] sm:$0xf] %vm297_vm10, %v294_v30 }
 0x300   :  { %302 = vst.msk [vmem:[#allocation2 + $0x1c] sm:$0xf] %vm300_vm11, %v626_v5 }
 0x302   :  { %v279_v31 = vpop.permute.xlu1 %278 }
 0x303   :  { %285 = vst.msk [vmem:[#allocation2 + $0x8] sm:$0xf] %vm284_vm12, %v279_v31  ;;  %v590_v32 = vld [vmem:[#allocation2 + $0x20] sm:$0xff]  }
 0x304   :  { %562 = vmatpush3.bf16.msra.mxu1 %v590_v32 }
 0x305   :  { %563 = vmatprep.subr.bf16.mxu1 %v629_v7 }
 0x306   :  { %v281_v33 = vpop.permute.xlu1 %280 }
 0x307   :  { %286 = vst.msk [vmem:[#allocation2 + $0xc] sm:$0xf] %vm284_vm12, %v281_v33  ;;  %v591_v35 = vld [vmem:[#allocation2 + $0x18] sm:$0xff]  }
 0x308   :  { %564 = vmatpush3.bf16.msra.mxu1 %v591_v35 }
 0x309   :  { %565 = vmatprep.subr.bf16.mxu1 %v629_v7 }
 0x30a   :  { %v269_v36 = vpop.permute.xlu1 %268 }
 0x30b   :  { %274 = vst.msk [vmem:[#allocation2 + $0x4] sm:$0xf] %vm272_vm7, %v269_v36 }
 0x30c   :  { %566 = vmatpush3.bf16.msra.mxu1 %v592_v37 }
 0x30d   :  { %567 = vmatprep.subr.bf16.mxu1 %v629_v7 }
 0x30e   :  { %v593_v5 = vld [vmem:[#allocation2 + $0x8] sm:$0xff]  }
 0x310   :  { %568 = vmatpush3.bf16.msra.mxu1 %v593_v5 }
 0x311   :  { %569 = vmatprep.subr.bf16.mxu1 %v629_v7 }
 0x312   :  { %v594_v38 = vld [vmem:[#allocation2] sm:$0xff]  }
 0x314   :  { %570 = vmatpush3.bf16.msra.mxu1 %v594_v38 }
 0x317   :  { %572 = vmatmul.mubr.msk.bf16.vlgmr.msra.gmra.mxu1 %vm362_vm13, %v595_v39 }
 0x3d7   :  { %v400_v40 = vpop.f32.mrf.mxu1 }
 0x3d8   :  { %v407_v41 = vmul.f32 %v730_v34, %v400_v40 }
 0x3d9   :  { %v573_v42 = vpop.f32.mrf.mxu1 }
 0x3da   :  { %409 = vadd.xlane.f32.xlu0 %v407_v41  ;;  %v415_v44 = vmul.f32 %v407_v41, %v407_v41 }
 0x3db   :  { %v403_v43 = vpop.f32.mrf.mxu1 }
 0x3dc   :  { %v408_v45 = vmul.f32 %v730_v34, %v403_v43 }
 0x3dd   :  { %v574_v46 = vpop.f32.mrf.mxu1 }
 0x3de   :  { %417 = vadd.xlane.f32.xlu0 %v415_v44  ;;  %411 = vadd.xlane.f32.xlu1 %v408_v45  ;;  %v416_v7 = vmul.f32 %v408_v45, %v408_v45 }
 0x3e2   :  { %419 = vadd.xlane.f32.xlu0 %v416_v7 }
 0x3f8   :  { %473 = vrot.lane.b32.xlu0 %v685_v0, %s628_s14  ;;  %v427_v0 = vld [vmem:[%s798_s6] sm:$0xff]  ;;  %s634_s6 = smov [#allocation3]  }
 0x3f9   :  { %s495_s7 = sshll.u32 %s634_s6, 4  ;;  %s496_s7 = int_to_ptr.vmem [resolvable:$true] %s495_s7 }
 0x3fa   :  { %s604_s12 = scalar_lea.vmem %s496_s7, 256  ;;  %p609_p1 = scmp.lt.s32.totalorder %s496_s7, %s496_s7 }
 0x3fb   :  { %p605_p0 = scmp.ne.s32.totalorder %s496_s7, %s604_s12  ;;  %p610_p2 = scmp.lt.s32.totalorder %s604_s12, %s604_s12 }
 0x3fd   :  { %p611_p3 = por %p610_p2, %p609_p1 }
 0x3ff   :  { %p612_p4 = pnand %p611_p3, %p605_p0 }
 0x463   :  { %v410_v47 = vpop.xlane.xlu0 %409 }
 0x464   :  { %v413_v48 = vmul.f32 0.03125, %v410_v47 }
 0x466   :  { %v423_v51 = vmul.f32 %v413_v48, %v413_v48 }
 0x467   :  { %v418_v49 = vpop.xlane.xlu0 %417  ;;  %v412_v50 = vpop.xlane.xlu1 %411 }
 0x468   :  { %v421_v52 = vmul.f32 0.03125, %v418_v49  ;;  %v414_v53 = vmul.f32 0.03125, %v412_v50 }
 0x46a   :  { %v425_v54 = vsub.f32 %v421_v52, %v423_v51  ;;  %v424_v57 = vmul.f32 %v414_v53, %v414_v53 }
 0x46b   :  { %v420_v55 = vpop.xlane.xlu0 %419 }
 0x46c   :  { %v429_v56 = vadd.f32 1e-05, %v425_v54  ;;  %v422_v34 = vmul.f32 0.03125, %v420_v55 }
 0x46e   :  { %600 = vrsqrt.f32 %v429_v56  ;;  %v426_v58 = vsub.f32 %v422_v34, %v424_v57 }
 0x46f   :  { %v474_v14 = vpop.permute.xlu0 %473 }
 0x470   :  { %v430_v59 = vadd.f32 1e-05, %v426_v58 }
 0x472   :  { %602 = vrsqrt.f32 %v430_v59 }
 0x47b   :  { %v601_v60 = vpop.eup %600 }
 0x47c   :  { %v433_v61 = vmul.f32 %v601_v60, %v427_v0 }
 0x47e   :  { %443 = vperm.xlu1 %586, %v433_v61   ;;  %v437_v3 = vmul.f32 %v433_v61, %v413_v48 }
 0x47f   :  { %v603_v6 = vpop.eup %602 }
 0x480   :  { %v439_v8 = vsub.f32 %v435_v62, %v437_v3  ;;  %v434_v9 = vmul.f32 %v603_v6, %v428_v63 }
 0x482   :  { %455 = vperm.xlu1 %586, %v439_v8   ;;  %448 = vperm.xlu0 %587, %v434_v9   ;;  %v438_v11 = vmul.f32 %v434_v9, %v414_v53 }
 0x484   :  { %v440_v12 = vsub.f32 %v436_v10, %v438_v11 }
 0x486   :  { %460 = vperm.xlu1 %586, %v440_v12   ;;  %477 = vrot.lane.b32.xlu0 %v695_v2, %s628_s14 }
 0x48a   :  { %475 = vrot.lane.b32.xlu1 %v690_v1, %s628_s14 }
 0x48e   :  { %479 = vrot.lane.b32.xlu1 %v702_v4, %s628_s14 }
 0x4f9   :  { %v444_v13 = vpop.permute.xlu1 %443 }
 0x4fa   :  { %v451_v17 = vmul.f32 %v444_v13, %v400_v40 }
 0x4fd   :  { %v456_v15 = vpop.permute.xlu1 %455  ;;  %v449_v18 = vpop.permute.xlu0 %448 }
 0x4fe   :  { %v463_v19 = vadd.f32 %v456_v15, %v451_v17  ;;  %v452_v22 = vmul.f32 %v449_v18, %v403_v43 }
 0x501   :  { %v461_v16 = vpop.permute.xlu1 %460  ;;  %v478_v24 = vpop.permute.xlu0 %477 }
 0x502   :  { %v464_v2 = vadd.f32 %v461_v16, %v452_v22 }
 0x505   :  { %v476_v20 = vpop.permute.xlu1 %475 }
 0x506   :  { %v482_v21 = vsel %vm79_vm2, %v474_v14, %v476_v20 }
 0x507   :  { %v486_v23 = vadd.f32 %v482_v21, %v463_v19 }
 0x509   :  { %488 = vst [vmem:[#allocation3] sm:$0xff] %v486_v23  ;;  %v480_v1 = vpop.permute.xlu1 %479 }
 0x50a   :  { %v483_v4 = vsel %vm79_vm2, %v478_v24, %v480_v1 }
 0x50b   :  { %v487_v25 = vadd.f32 %v483_v4, %v464_v2 }
 0x50d   :  { %489 = vst [vmem:[#allocation3 + $0x8] sm:$0xff] %v487_v25 }
 0x50e   :  { %615 = shalt.err (!%p612_p4)
}
 0x50f   :  { %s635_s13 = smov 128   ;;  %s636_s14 = smov 8  }
 0x510   :  { %501 = dma.vmem_to_hbm [thread:$0]  %s496_s7, 256, %s800_s8, [#allocation4], %s635_s13, %s635_s13, %s636_s14  }
 0x511   :  { %624 = dma.done.wait [#allocation4], 256  }
 0x512   :  { %625 = vsyncadd [#allocation4], 4294967040 }
 0x513   :  { %505 = vsyncpa [#allocation4], 1 }

</bundles_post_ra>
